<compile_context>
chip_gen: v7x
topology: tpu7x:2x2x1
jax: 0.10.0
libtpu: 0.0.40
codegen_flags: <defaults>
</compile_context>

<pallas_src>
import functools
import math

import jax
import jax.numpy as jnp
from jax.experimental import pallas as pl
from jax.experimental.pallas import tpu as pltpu

# TODO(synk): config['loss']['weighted_mae_weight'] is never supplied by the
# module's __init__ (the PyTorch code would actually crash there); use a fixed
# deterministic synthetic value instead.
WEIGHTED_MAE_WEIGHT = 2.0
ALPHA = 1.0
BETA = 1.0
SMOOTH = 1 - 9          # faithfully matches the (suspicious) PyTorch default == -8

LANES = 128             # lane tile (last dim)
MAX_TM = 1024           # rows per grid step: (1024,128) f32 block = 512 KiB
NUM_CORES = 2           # leading "parallel" grid axis -> both TCs on v7x


def _loss_kernel(x_ref, t_ref, mae_ref, sx_ref, st_ref, tp_ref,
                 *, n_valid, tm, kpc, first_partial_block, log_w):
    c = pl.program_id(0)        # core / outer-parallel index
    k = pl.program_id(1)        # chunk index within this core

    @pl.when(k == 0)
    def _init():
        mae_ref[...] = jnp.zeros_like(mae_ref)
        sx_ref[...] = jnp.zeros_like(sx_ref)
        st_ref[...] = jnp.zeros_like(st_ref)
        tp_ref[...] = jnp.zeros_like(tp_ref)

    # Cast in-kernel (free on the VPU); inputs stay in their native dtype in HBM.
    x = x_ref[...].astype(jnp.float32)
    t = t_ref[...].astype(jnp.float32)

    # Per-element terms.  FP/FN sums are derived from sum(sx)/sum(st)/sum(tp)
    # outside the kernel, so only four terms are accumulated here.
    mae = jnp.abs(x - t) * jnp.exp(t * log_w)      # |x - t| * weight**t
    sx = jax.nn.sigmoid(x)
    st = jax.nn.sigmoid(t)
    tp = sx * st

    def _fold(v):
        # (tm, LANES) -> (1, 8, LANES): sublane-tile-aligned vreg adds (VPU only).
        # The cross-lane / cross-sublane reduction is deferred to the epilogue
        # (done in plain JAX on the tiny per-core partial slabs).
        return v.reshape(tm // 8, 8, LANES).sum(axis=0, keepdims=True)

    def _accum(mae_v, sx_v, st_v, tp_v):
        mae_ref[...] += _fold(mae_v)
        sx_ref[...] += _fold(sx_v)
        st_ref[...] += _fold(st_v)
        tp_ref[...] += _fold(tp_v)

    g = c * kpc + k             # logical global block id

    @pl.when(g < first_partial_block)       # fully-valid block: no mask work
    def _fast():
        _accum(mae, sx, st, tp)

    @pl.when(g >= first_partial_block)      # ragged tail (or phantom) block
    def _masked():
        row = jax.lax.broadcasted_iota(jnp.int32, (tm, LANES), 0)
        col = jax.lax.broadcasted_iota(jnp.int32, (tm, LANES), 1)
        flat = (g * tm + row) * LANES + col
        valid = flat < n_valid
        zero = jnp.float32(0.0)
        _accum(jnp.where(valid, mae, zero), jnp.where(valid, sx, zero),
               jnp.where(valid, st, zero), jnp.where(valid, tp, zero))


def tversky_loss_plus_weight_mae_split(inputs, targets,
                                       smooth=SMOOTH, alpha=ALPHA, beta=BETA,
                                       weight=WEIGHTED_MAE_WEIGHT):
    """Pallas implementation of TverskyLossPlusWEIGHTMAESplit.forward."""
    assert inputs.shape == targets.shape
    n = int(math.prod(inputs.shape))

    # Keep the native dtype; only flatten (order-preserving, metadata-only).
    x = inputs.reshape(-1)
    t = targets.reshape(-1)

    # Pad only up to a lane multiple (a no-op for typical NCHW sizes); the
    # ragged sublane tail is handled by the in-kernel validity mask.
    lane_pad = (-n) % LANES
    if lane_pad:
        x = jnp.pad(x, (0, lane_pad))
        t = jnp.pad(t, (0, lane_pad))
    m = (n + lane_pad) // LANES
    x = x.reshape(m, LANES)
    t = t.reshape(m, LANES)

    tm = min(MAX_TM, ((m + 7) // 8) * 8)        # multiple of 8, <= MAX_TM
    total_blocks = pl.cdiv(m, tm)
    num_cores = min(NUM_CORES, total_blocks)
    kpc = pl.cdiv(total_blocks, num_cores)      # chunks per core (inner grid)
    first_partial_block = n // (tm * LANES)     # first block needing a mask

    def in_map(c, k):
        # Clamp so a core's phantom trailing block re-reads the last valid
        # block (its contribution is fully masked out in the kernel).
        return (jnp.minimum(c * kpc + k, total_blocks - 1), 0)

    def out_map(c, k):
        return (c, 0, 0)

    kernel = functools.partial(
        _loss_kernel, n_valid=n, tm=tm, kpc=kpc,
        first_partial_block=first_partial_block,
        log_w=float(math.log(weight)))

    acc_shape = jax.ShapeDtypeStruct((num_cores, 8, LANES), jnp.float32)
    acc_spec = pl.BlockSpec((1, 8, LANES), out_map)

    mae_p, sx_p, st_p, tp_p = pl.pallas_call(
        kernel,
        out_shape=(acc_shape,) * 4,
        grid_spec=pltpu.PrefetchScalarGridSpec(
            num_scalar_prefetch=0,
            grid=(num_cores, kpc),
            in_specs=[pl.BlockSpec((tm, LANES), in_map),
                      pl.BlockSpec((tm, LANES), in_map)],
            out_specs=(acc_spec,) * 4,
        ),
        compiler_params=pltpu.CompilerParams(
            dimension_semantics=("parallel", "arbitrary"),
            vmem_limit_bytes=32 * 1024 * 1024),
    )(x, t)

    # Tiny final combine in plain JAX (per-core (8,128) partial slabs -> scalars).
    mae_sum = jnp.sum(mae_p)
    sx_sum = jnp.sum(sx_p)
    st_sum = jnp.sum(st_p)
    tp_sum = jnp.sum(tp_p)

    mae_mean = mae_sum / jnp.float32(n)
    fp_sum = sx_sum - tp_sum
    fn_sum = st_sum - tp_sum
    tversky = (tp_sum + smooth) / (tp_sum + alpha * fp_sum + beta * fn_sum + smooth)
    return (1.0 - tversky) + mae_mean


def _reference(inputs, targets,
               smooth=SMOOTH, alpha=ALPHA, beta=BETA, weight=WEIGHTED_MAE_WEIGHT):
    inputs = inputs.astype(jnp.float32)
    targets = targets.astype(jnp.float32)
    mae = jnp.mean(jnp.abs(inputs - targets) * jnp.power(weight, targets))
    si = jax.nn.sigmoid(inputs).reshape(-1)
    st = jax.nn.sigmoid(targets).reshape(-1)
    tp = jnp.sum(si * st)
    fp = jnp.sum((1 - st) * si)
    fn = jnp.sum(st * (1 - si))
    tversky = (tp + smooth) / (tp + alpha * fp + beta * fn + smooth)
    return (1 - tversky) + mae


if __name__ == "__main__":
    key = jax.random.PRNGKey(0)
    k1, k2 = jax.random.split(key)
    # NCHW-like logits: batch=2, channels=4, spatial=16x16
    preds = jax.random.normal(k1, (2, 4, 16, 16), dtype=jnp.float32)
    gts = jax.random.normal(k2, (2, 4, 16, 16), dtype=jnp.float32)

    loss = jax.block_until_ready(tversky_loss_plus_weight_mae_split(preds, gts))
    ref = jax.block_until_ready(_reference(preds, gts))

    assert jnp.isfinite(loss), loss
    assert abs(float(loss) - float(ref)) < 1e-3, (float(loss), float(ref))
    print("KERNEL_OK")
</pallas_src>

<mosaic_0001>
module attributes {stable_mosaic.version = 11 : i64} {
  func.func @_loss_kernel(%arg0: i32, %arg1: i32, %arg2: memref<16x128xf32, #tpu.memory_space<vmem>>, %arg3: memref<16x128xf32, #tpu.memory_space<vmem>>, %arg4: memref<1x8x128xf32, #tpu.memory_space<vmem>>, %arg5: memref<1x8x128xf32, #tpu.memory_space<vmem>>, %arg6: memref<1x8x128xf32, #tpu.memory_space<vmem>>, %arg7: memref<1x8x128xf32, #tpu.memory_space<vmem>>) attributes {dimension_semantics = [#tpu.dimension_semantics<parallel>, #tpu.dimension_semantics<arbitrary>], iteration_bounds = array<i64: 1, 1>, scalar_prefetch = 0 : i64, scratch_operands = 0 : i64, tpu.core_type = #tpu.core_type<tc>, window_params = [{transform_indices = @transform_0, window_bounds = array<i64: 16, 128>}, {transform_indices = @transform_1, window_bounds = array<i64: 16, 128>}, {transform_indices = @transform_2, window_bounds = array<i64: 1, 8, 128>}, {transform_indices = @transform_3, window_bounds = array<i64: 1, 8, 128>}, {transform_indices = @transform_4, window_bounds = array<i64: 1, 8, 128>}, {transform_indices = @transform_5, window_bounds = array<i64: 1, 8, 128>}]} {
    %c0_i32 = arith.constant 0 : i32
    %0 = arith.cmpi eq, %arg1, %c0_i32 : i32
    %1 = arith.extui %0 : i1 to i32
    %c0_i32_0 = arith.constant 0 : i32
    %2 = arith.cmpi ne, %1, %c0_i32_0 : i32
    scf.if %2 {
      %cst_10 = arith.constant 0.000000e+00 : f32
      %30 = vector.broadcast %cst_10 : f32 to vector<1x8x128xf32>
      %c0_11 = arith.constant 0 : index
      %c0_12 = arith.constant 0 : index
      %c0_13 = arith.constant 0 : index
      %31 = vector.load %arg4[%c0_11, %c0_12, %c0_13] : memref<1x8x128xf32, #tpu.memory_space<vmem>>, vector<1x8x128xf32>
      tpu.vector_store %arg4[%c0_11, %c0_12, %c0_13], %30 {strides = array<i32>} : memref<1x8x128xf32, #tpu.memory_space<vmem>>, vector<1x8x128xf32>,
      %cst_14 = arith.constant 0.000000e+00 : f32
      %32 = vector.broadcast %cst_14 : f32 to vector<1x8x128xf32>
      %c0_15 = arith.constant 0 : index
      %c0_16 = arith.constant 0 : index
      %c0_17 = arith.constant 0 : index
      %33 = vector.load %arg5[%c0_15, %c0_16, %c0_17] : memref<1x8x128xf32, #tpu.memory_space<vmem>>, vector<1x8x128xf32>
      tpu.vector_store %arg5[%c0_15, %c0_16, %c0_17], %32 {strides = array<i32>} : memref<1x8x128xf32, #tpu.memory_space<vmem>>, vector<1x8x128xf32>,
      %cst_18 = arith.constant 0.000000e+00 : f32
      %34 = vector.broadcast %cst_18 : f32 to vector<1x8x128xf32>
      %c0_19 = arith.constant 0 : index
      %c0_20 = arith.constant 0 : index
      %c0_21 = arith.constant 0 : index
      %35 = vector.load %arg6[%c0_19, %c0_20, %c0_21] : memref<1x8x128xf32, #tpu.memory_space<vmem>>, vector<1x8x128xf32>
      tpu.vector_store %arg6[%c0_19, %c0_20, %c0_21], %34 {strides = array<i32>} : memref<1x8x128xf32, #tpu.memory_space<vmem>>, vector<1x8x128xf32>,
      %cst_22 = arith.constant 0.000000e+00 : f32
      %36 = vector.broadcast %cst_22 : f32 to vector<1x8x128xf32>
      %c0_23 = arith.constant 0 : index
      %c0_24 = arith.constant 0 : index
      %c0_25 = arith.constant 0 : index
      %37 = vector.load %arg7[%c0_23, %c0_24, %c0_25] : memref<1x8x128xf32, #tpu.memory_space<vmem>>, vector<1x8x128xf32>
      tpu.vector_store %arg7[%c0_23, %c0_24, %c0_25], %36 {strides = array<i32>} : memref<1x8x128xf32, #tpu.memory_space<vmem>>, vector<1x8x128xf32>,
    } else {
    }
    %c0 = arith.constant 0 : index
    %c0_1 = arith.constant 0 : index
    %3 = vector.load %arg2[%c0, %c0_1] : memref<16x128xf32, #tpu.memory_space<vmem>>, vector<16x128xf32>
    %c0_2 = arith.constant 0 : index
    %c0_3 = arith.constant 0 : index
    %4 = vector.load %arg3[%c0_2, %c0_3] : memref<16x128xf32, #tpu.memory_space<vmem>>, vector<16x128xf32>
    %5 = arith.subf %3, %4 : vector<16x128xf32>
    %6 = math.absf %5 : vector<16x128xf32>
    %cst = arith.constant 0.693147182 : f32
    %7 = vector.broadcast %cst : f32 to vector<16x128xf32>
    %8 = arith.mulf %4, %7 : vector<16x128xf32>
    %9 = math.exp %8 : vector<16x128xf32>
    %10 = arith.mulf %6, %9 : vector<16x128xf32>
    %11 = arith.negf %3 : vector<16x128xf32>
    %12 = math.exp %11 : vector<16x128xf32>
    %cst_4 = arith.constant 1.000000e+00 : f32
    %13 = vector.broadcast %cst_4 : f32 to vector<16x128xf32>
    %14 = arith.addf %13, %12 : vector<16x128xf32>
    %15 = arith.divf %13, %14 : vector<16x128xf32>
    %16 = arith.negf %4 : vector<16x128xf32>
    %17 = math.exp %16 : vector<16x128xf32>
    %cst_5 = arith.constant 1.000000e+00 : f32
    %18 = vector.broadcast %cst_5 : f32 to vector<16x128xf32>
    %19 = arith.addf %18, %17 : vector<16x128xf32>
    %20 = arith.divf %18, %19 : vector<16x128xf32>
    %21 = arith.mulf %15, %20 : vector<16x128xf32>
    %c1_i32 = arith.constant 1 : i32
    %22 = arith.muli %arg0, %c1_i32 : i32
    %23 = arith.addi %22, %arg1 : i32
    %c1_i32_6 = arith.constant 1 : i32
    %24 = arith.cmpi slt, %23, %c1_i32_6 : i32
    %25 = arith.extui %24 : i1 to i32
    %c0_i32_7 = arith.constant 0 : i32
    %26 = arith.cmpi ne, %25, %c0_i32_7 : i32
    scf.if %26 {
      %c0_10 = arith.constant 0 : index
      %c0_11 = arith.constant 0 : index
      %c0_12 = arith.constant 0 : index
      %30 = vector.load %arg4[%c0_10, %c0_11, %c0_12] : memref<1x8x128xf32, #tpu.memory_space<vmem>>, vector<1x8x128xf32>
      %31 = vector.shape_cast %10 : vector<16x128xf32> to vector<2x8x128xf32>
      %cst_13 = arith.constant dense<0.000000e+00> : vector<8x128xf32>
      %32 = vector.multi_reduction <add>, %31, %cst_13 [0] : vector<2x8x128xf32> to vector<8x128xf32>
      %33 = vector.shape_cast %32 : vector<8x128xf32> to vector<1x8x128xf32>
      %34 = arith.addf %30, %33 : vector<1x8x128xf32>
      %c0_14 = arith.constant 0 : index
      %c0_15 = arith.constant 0 : index
      %c0_16 = arith.constant 0 : index
      %35 = vector.load %arg4[%c0_14, %c0_15, %c0_16] : memref<1x8x128xf32, #tpu.memory_space<vmem>>, vector<1x8x128xf32>
      tpu.vector_store %arg4[%c0_14, %c0_15, %c0_16], %34 {strides = array<i32>} : memref<1x8x128xf32, #tpu.memory_space<vmem>>, vector<1x8x128xf32>,
      %c0_17 = arith.constant 0 : index
      %c0_18 = arith.constant 0 : index
      %c0_19 = arith.constant 0 : index
      %36 = vector.load %arg5[%c0_17, %c0_18, %c0_19] : memref<1x8x128xf32, #tpu.memory_space<vmem>>, vector<1x8x128xf32>
      %37 = vector.shape_cast %15 : vector<16x128xf32> to vector<2x8x128xf32>
      %cst_20 = arith.constant dense<0.000000e+00> : vector<8x128xf32>
      %38 = vector.multi_reduction <add>, %37, %cst_20 [0] : vector<2x8x128xf32> to vector<8x128xf32>
      %39 = vector.shape_cast %38 : vector<8x128xf32> to vector<1x8x128xf32>
      %40 = arith.addf %36, %39 : vector<1x8x128xf32>
      %c0_21 = arith.constant 0 : index
      %c0_22 = arith.constant 0 : index
      %c0_23 = arith.constant 0 : index
      %41 = vector.load %arg5[%c0_21, %c0_22, %c0_23] : memref<1x8x128xf32, #tpu.memory_space<vmem>>, vector<1x8x128xf32>
      tpu.vector_store %arg5[%c0_21, %c0_22, %c0_23], %40 {strides = array<i32>} : memref<1x8x128xf32, #tpu.memory_space<vmem>>, vector<1x8x128xf32>,
      %c0_24 = arith.constant 0 : index
      %c0_25 = arith.constant 0 : index
      %c0_26 = arith.constant 0 : index
      %42 = vector.load %arg6[%c0_24, %c0_25, %c0_26] : memref<1x8x128xf32, #tpu.memory_space<vmem>>, vector<1x8x128xf32>
      %43 = vector.shape_cast %20 : vector<16x128xf32> to vector<2x8x128xf32>
      %cst_27 = arith.constant dense<0.000000e+00> : vector<8x128xf32>
      %44 = vector.multi_reduction <add>, %43, %cst_27 [0] : vector<2x8x128xf32> to vector<8x128xf32>
      %45 = vector.shape_cast %44 : vector<8x128xf32> to vector<1x8x128xf32>
      %46 = arith.addf %42, %45 : vector<1x8x128xf32>
      %c0_28 = arith.constant 0 : index
      %c0_29 = arith.constant 0 : index
      %c0_30 = arith.constant 0 : index
      %47 = vector.load %arg6[%c0_28, %c0_29, %c0_30] : memref<1x8x128xf32, #tpu.memory_space<vmem>>, vector<1x8x128xf32>
      tpu.vector_store %arg6[%c0_28, %c0_29, %c0_30], %46 {strides = array<i32>} : memref<1x8x128xf32, #tpu.memory_space<vmem>>, vector<1x8x128xf32>,
      %c0_31 = arith.constant 0 : index
      %c0_32 = arith.constant 0 : index
      %c0_33 = arith.constant 0 : index
      %48 = vector.load %arg7[%c0_31, %c0_32, %c0_33] : memref<1x8x128xf32, #tpu.memory_space<vmem>>, vector<1x8x128xf32>
      %49 = vector.shape_cast %21 : vector<16x128xf32> to vector<2x8x128xf32>
      %cst_34 = arith.constant dense<0.000000e+00> : vector<8x128xf32>
      %50 = vector.multi_reduction <add>, %49, %cst_34 [0] : vector<2x8x128xf32> to vector<8x128xf32>
      %51 = vector.shape_cast %50 : vector<8x128xf32> to vector<1x8x128xf32>
      %52 = arith.addf %48, %51 : vector<1x8x128xf32>
      %c0_35 = arith.constant 0 : index
      %c0_36 = arith.constant 0 : index
      %c0_37 = arith.constant 0 : index
      %53 = vector.load %arg7[%c0_35, %c0_36, %c0_37] : memref<1x8x128xf32, #tpu.memory_space<vmem>>, vector<1x8x128xf32>
      tpu.vector_store %arg7[%c0_35, %c0_36, %c0_37], %52 {strides = array<i32>} : memref<1x8x128xf32, #tpu.memory_space<vmem>>, vector<1x8x128xf32>,
    } else {
    }
    %c1_i32_8 = arith.constant 1 : i32
    %27 = arith.cmpi sge, %23, %c1_i32_8 : i32
    %28 = arith.extui %27 : i1 to i32
    %c0_i32_9 = arith.constant 0 : i32
    %29 = arith.cmpi ne, %28, %c0_i32_9 : i32
    scf.if %29 {
      %30 = tpu.iota {dimensions = array<i32: 0>} : vector<16x128xi32>
      %31 = tpu.iota {dimensions = array<i32: 1>} : vector<16x128xi32>
      %c16_i32 = arith.constant 16 : i32
      %32 = arith.muli %23, %c16_i32 : i32
      %33 = vector.broadcast %32 : i32 to vector<16x128xi32>
      %34 = arith.addi %33, %30 : vector<16x128xi32>
      %c128_i32 = arith.constant 128 : i32
      %35 = vector.broadcast %c128_i32 : i32 to vector<16x128xi32>
      %36 = arith.muli %34, %35 : vector<16x128xi32>
      %37 = arith.addi %36, %31 : vector<16x128xi32>
      %c2048_i32 = arith.constant 2048 : i32
      %38 = vector.broadcast %c2048_i32 : i32 to vector<16x128xi32>
      %39 = arith.cmpi slt, %37, %38 : vector<16x128xi32>
      %cst_10 = arith.constant 0.000000e+00 : f32
      %40 = vector.broadcast %cst_10 : f32 to vector<16x128xf32>
      %41 = arith.select %39, %10, %40 : vector<16x128xi1>, vector<16x128xf32>
      %cst_11 = arith.constant 0.000000e+00 : f32
      %42 = vector.broadcast %cst_11 : f32 to vector<16x128xf32>
      %43 = arith.select %39, %15, %42 : vector<16x128xi1>, vector<16x128xf32>
      %cst_12 = arith.constant 0.000000e+00 : f32
      %44 = vector.broadcast %cst_12 : f32 to vector<16x128xf32>
      %45 = arith.select %39, %20, %44 : vector<16x128xi1>, vector<16x128xf32>
      %cst_13 = arith.constant 0.000000e+00 : f32
      %46 = vector.broadcast %cst_13 : f32 to vector<16x128xf32>
      %47 = arith.select %39, %21, %46 : vector<16x128xi1>, vector<16x128xf32>
      %c0_14 = arith.constant 0 : index
      %c0_15 = arith.constant 0 : index
      %c0_16 = arith.constant 0 : index
      %48 = vector.load %arg4[%c0_14, %c0_15, %c0_16] : memref<1x8x128xf32, #tpu.memory_space<vmem>>, vector<1x8x128xf32>
      %49 = vector.shape_cast %41 : vector<16x128xf32> to vector<2x8x128xf32>
      %cst_17 = arith.constant dense<0.000000e+00> : vector<8x128xf32>
      %50 = vector.multi_reduction <add>, %49, %cst_17 [0] : vector<2x8x128xf32> to vector<8x128xf32>
      %51 = vector.shape_cast %50 : vector<8x128xf32> to vector<1x8x128xf32>
      %52 = arith.addf %48, %51 : vector<1x8x128xf32>
      %c0_18 = arith.constant 0 : index
      %c0_19 = arith.constant 0 : index
      %c0_20 = arith.constant 0 : index
      %53 = vector.load %arg4[%c0_18, %c0_19, %c0_20] : memref<1x8x128xf32, #tpu.memory_space<vmem>>, vector<1x8x128xf32>
      tpu.vector_store %arg4[%c0_18, %c0_19, %c0_20], %52 {strides = array<i32>} : memref<1x8x128xf32, #tpu.memory_space<vmem>>, vector<1x8x128xf32>,
      %c0_21 = arith.constant 0 : index
      %c0_22 = arith.constant 0 : index
      %c0_23 = arith.constant 0 : index
      %54 = vector.load %arg5[%c0_21, %c0_22, %c0_23] : memref<1x8x128xf32, #tpu.memory_space<vmem>>, vector<1x8x128xf32>
      %55 = vector.shape_cast %43 : vector<16x128xf32> to vector<2x8x128xf32>
      %cst_24 = arith.constant dense<0.000000e+00> : vector<8x128xf32>
      %56 = vector.multi_reduction <add>, %55, %cst_24 [0] : vector<2x8x128xf32> to vector<8x128xf32>
      %57 = vector.shape_cast %56 : vector<8x128xf32> to vector<1x8x128xf32>
      %58 = arith.addf %54, %57 : vector<1x8x128xf32>
      %c0_25 = arith.constant 0 : index
      %c0_26 = arith.constant 0 : index
      %c0_27 = arith.constant 0 : index
      %59 = vector.load %arg5[%c0_25, %c0_26, %c0_27] : memref<1x8x128xf32, #tpu.memory_space<vmem>>, vector<1x8x128xf32>
      tpu.vector_store %arg5[%c0_25, %c0_26, %c0_27], %58 {strides = array<i32>} : memref<1x8x128xf32, #tpu.memory_space<vmem>>, vector<1x8x128xf32>,
      %c0_28 = arith.constant 0 : index
      %c0_29 = arith.constant 0 : index
      %c0_30 = arith.constant 0 : index
      %60 = vector.load %arg6[%c0_28, %c0_29, %c0_30] : memref<1x8x128xf32, #tpu.memory_space<vmem>>, vector<1x8x128xf32>
      %61 = vector.shape_cast %45 : vector<16x128xf32> to vector<2x8x128xf32>
      %cst_31 = arith.constant dense<0.000000e+00> : vector<8x128xf32>
      %62 = vector.multi_reduction <add>, %61, %cst_31 [0] : vector<2x8x128xf32> to vector<8x128xf32>
      %63 = vector.shape_cast %62 : vector<8x128xf32> to vector<1x8x128xf32>
      %64 = arith.addf %60, %63 : vector<1x8x128xf32>
      %c0_32 = arith.constant 0 : index
      %c0_33 = arith.constant 0 : index
      %c0_34 = arith.constant 0 : index
      %65 = vector.load %arg6[%c0_32, %c0_33, %c0_34] : memref<1x8x128xf32, #tpu.memory_space<vmem>>, vector<1x8x128xf32>
      tpu.vector_store %arg6[%c0_32, %c0_33, %c0_34], %64 {strides = array<i32>} : memref<1x8x128xf32, #tpu.memory_space<vmem>>, vector<1x8x128xf32>,
      %c0_35 = arith.constant 0 : index
      %c0_36 = arith.constant 0 : index
      %c0_37 = arith.constant 0 : index
      %66 = vector.load %arg7[%c0_35, %c0_36, %c0_37] : memref<1x8x128xf32, #tpu.memory_space<vmem>>, vector<1x8x128xf32>
      %67 = vector.shape_cast %47 : vector<16x128xf32> to vector<2x8x128xf32>
      %cst_38 = arith.constant dense<0.000000e+00> : vector<8x128xf32>
      %68 = vector.multi_reduction <add>, %67, %cst_38 [0] : vector<2x8x128xf32> to vector<8x128xf32>
      %69 = vector.shape_cast %68 : vector<8x128xf32> to vector<1x8x128xf32>
      %70 = arith.addf %66, %69 : vector<1x8x128xf32>
      %c0_39 = arith.constant 0 : index
      %c0_40 = arith.constant 0 : index
      %c0_41 = arith.constant 0 : index
      %71 = vector.load %arg7[%c0_39, %c0_40, %c0_41] : memref<1x8x128xf32, #tpu.memory_space<vmem>>, vector<1x8x128xf32>
      tpu.vector_store %arg7[%c0_39, %c0_40, %c0_41], %70 {strides = array<i32>} : memref<1x8x128xf32, #tpu.memory_space<vmem>>, vector<1x8x128xf32>,
    } else {
    }
    return
  }
  func.func @transform_0(%arg0: i32, %arg1: i32) -> (i32, i32) {
    %c1_i32 = arith.constant 1 : i32
    %0 = arith.muli %arg0, %c1_i32 : i32
    %1 = arith.addi %0, %arg1 : i32
    %c0_i32 = arith.constant 0 : i32
    %2 = arith.minsi %1, %c0_i32 : i32
    %c0_i32_0 = arith.constant 0 : i32
    %c0_i32_1 = arith.constant 0 : i32
    return %2, %c0_i32_0 : i32, i32
  }
  func.func @transform_1(%arg0: i32, %arg1: i32) -> (i32, i32) {
    %c1_i32 = arith.constant 1 : i32
    %0 = arith.muli %arg0, %c1_i32 : i32
    %1 = arith.addi %0, %arg1 : i32
    %c0_i32 = arith.constant 0 : i32
    %2 = arith.minsi %1, %c0_i32 : i32
    %c0_i32_0 = arith.constant 0 : i32
    %c0_i32_1 = arith.constant 0 : i32
    return %2, %c0_i32_0 : i32, i32
  }
  func.func @transform_2(%arg0: i32, %arg1: i32) -> (i32, i32, i32) {
    %c0_i32 = arith.constant 0 : i32
    %c0_i32_0 = arith.constant 0 : i32
    %c0_i32_1 = arith.constant 0 : i32
    return %arg0, %c0_i32, %c0_i32_0 : i32, i32, i32
  }
  func.func @transform_3(%arg0: i32, %arg1: i32) -> (i32, i32, i32) {
    %c0_i32 = arith.constant 0 : i32
    %c0_i32_0 = arith.constant 0 : i32
    %c0_i32_1 = arith.constant 0 : i32
    return %arg0, %c0_i32, %c0_i32_0 : i32, i32, i32
  }
  func.func @transform_4(%arg0: i32, %arg1: i32) -> (i32, i32, i32) {
    %c0_i32 = arith.constant 0 : i32
    %c0_i32_0 = arith.constant 0 : i32
    %c0_i32_1 = arith.constant 0 : i32
    return %arg0, %c0_i32, %c0_i32_0 : i32, i32, i32
  }
  func.func @transform_5(%arg0: i32, %arg1: i32) -> (i32, i32, i32) {
    %c0_i32 = arith.constant 0 : i32
    %c0_i32_0 = arith.constant 0 : i32
    %c0_i32_1 = arith.constant 0 : i32
    return %arg0, %c0_i32, %c0_i32_0 : i32, i32, i32
  }
}

</mosaic_0001>

<bundles_post_ra>
// kernel: tpu_custom_call.1
= control target key start
LH: loop header
LB: loop body
LE: loop exit
PB: predicated region body
PF: predicated region fallthrough
CT: control target
= control target key end

     0   :  { %11 = vsyncpa [#allocation3], 0  ;;  %s526_s0 = inlined_call_operand.hbm [shape: f32[16,128], index: 0, kind: input, shape index: {}]   ;;  %s527_s1 = inlined_call_operand.hbm [shape: f32[16,128], index: 1, kind: input, shape index: {}]   ;;  %s528_s2 = inlined_call_operand.hbm [shape: f32[1,8,128], index: 2, kind: output, shape index: {0}]   ;;  %s529_s3 = inlined_call_operand.hbm [shape: f32[1,8,128], index: 3, kind: output, shape index: {1}]   ;;  %s530_s4 = inlined_call_operand.hbm [shape: f32[1,8,128], index: 4, kind: output, shape index: {2}]   ;;  %s531_s5 = inlined_call_operand.hbm [shape: f32[1,8,128], index: 5, kind: output, shape index: {3}]  }
   0x1   :  { %12 = vsyncpa [#allocation6], 0 }
   0x2   :  { %13 = vsyncpa [#allocation4], 0 }
   0x3   :  { %14 = vsyncpa [#allocation9], 0 }
   0x4   :  { %15 = vsyncpa [#allocation12], 0  ;;  %s416_s18 = smov [#allocation2]   ;;  %s274_s22 = scalar_lea.hbm %s526_s0, 256 }
   0x5   :  { %s27_s19 = sshll.u32 %s416_s18, 4  ;;  %p275_p0 = scmp.ne.s32.totalorder %s526_s0, %s274_s22  ;;  %s28_s19 = int_to_ptr.vmem [resolvable:$true] %s27_s19 }
   0x6   :  { %p278_p1 = scmp.lt.u32.totalorder %s274_s22, %s526_s0 }
   0x8   :  { %p280_p2 = pnand %p278_p1, %p275_p0 }
   0xa   :  { %283 = shalt.err (!%p280_p2)
}
   0xb   :  { %s284_s27 = scalar_lea.vmem %s28_s19, 256  ;;  %p289_p4 = scmp.lt.s32.totalorder %s28_s19, %s28_s19 }
   0xc   :  { %p285_p3 = scmp.ne.s32.totalorder %s28_s19, %s284_s27  ;;  %p290_p5 = scmp.lt.s32.totalorder %s284_s27, %s284_s27 }
   0xe   :  { %p291_p6 = por %p290_p5, %p289_p4 }
  0x10   :  { %p292_p7 = pnand %p291_p6, %p285_p3 }
  0x12   :  { %295 = shalt.err (!%p292_p7)
}
  0x13   :  { %s417_s28 = smov 128   ;;  %s418_s29 = smov 8  }
  0x14   :  { %33 = dma.hbm_to_vmem [thread:$0]  %s526_s0, 256, %s28_s19, [#allocation3], %s417_s28, %s417_s28, %s418_s29  }
  0x15   :  { %s419_s7 = smov [#allocation5]   ;;  %s296_s11 = scalar_lea.hbm %s527_s1, 256 }
  0x16   :  { %s45_s8 = sshll.u32 %s419_s7, 4  ;;  %p297_p8 = scmp.ne.s32.totalorder %s527_s1, %s296_s11  ;;  %s46_s8 = int_to_ptr.vmem [resolvable:$true] %s45_s8 }
  0x17   :  { %p300_p9 = scmp.lt.u32.totalorder %s296_s11, %s527_s1 }
  0x19   :  { %p302_p10 = pnand %p300_p9, %p297_p8 }
  0x1b   :  { %305 = shalt.err (!%p302_p10)
}
  0x1c   :  { %s306_s16 = scalar_lea.vmem %s46_s8, 256  ;;  %p311_p12 = scmp.lt.s32.totalorder %s46_s8, %s46_s8 }
  0x1d   :  { %p307_p11 = scmp.ne.s32.totalorder %s46_s8, %s306_s16  ;;  %p312_p13 = scmp.lt.s32.totalorder %s306_s16, %s306_s16 }
  0x1f   :  { %p313_p0 = por %p312_p13, %p311_p12 }
  0x21   :  { %p314_p1 = pnand %p313_p0, %p307_p11 }
  0x23   :  { %317 = shalt.err (!%p314_p1)
}
  0x24   :  { %51 = dma.hbm_to_vmem [thread:$0]  %s527_s1, 256, %s46_s8, [#allocation6], %s417_s28, %s417_s28, %s418_s29  }
  0x25   :  { %406 = dma.done.wait [#allocation3], 256  }
  0x26   :  { %407 = vsyncadd [#allocation3], 4294967040 }
  0x27   :  { %408 = dma.done.wait [#allocation6], 256  }
  0x28   :  { %409 = vsyncadd [#allocation6], 4294967040  ;;  %v74_v0 = vld [vmem:[#allocation2] sm:$0xff]  ;;  %v75_v1 = vld [vmem:[#allocation2 + $0x8] sm:$0xff]  ;;  %s420_s1 = smov [#allocation7]  }
  0x29   :  { %v76_v2 = vld [vmem:[#allocation5] sm:$0xff]  ;;  %v241_v3 = vmul.f32 -1.442695, %v74_v0  ;;  %v242_v4 = vmul.f32 -1.442695, %v75_v1  ;;  %v77_v5 = vld [vmem:[#allocation5 + $0x8] sm:$0xff] }
  0x2a   :  { %v82_v6 = vmul.f32 0.6931472, %v76_v2  ;;  %v83_v7 = vmul.f32 0.6931472, %v77_v5  ;;  %v243_v8 = vmul.f32 -1.442695, %v76_v2  ;;  %v78_v12 = vsub.f32 %v74_v0, %v76_v2 }
  0x2b   :  { %254 = vpow2.f32 %v241_v3  ;;  %v244_v11 = vmul.f32 -1.442695, %v77_v5  ;;  %v79_v13 = vsub.f32 %v75_v1, %v77_v5  ;;  %s186_s18 = sshll.u32 %s420_s1, 4  ;;  %s187_s18 = int_to_ptr.vmem [resolvable:$true] %s186_s18 }
  0x2c   :  { %256 = vpow2.f32 %v242_v4  ;;  %v84_v9 = vmul.f32 1.442695, %v82_v6  ;;  %v86_v10 = vmul.f32 1.442695, %v83_v7  ;;  %v80_v15 = vand.u32 2147483647, %v78_v12  ;;  %p323_p3 = scmp.lt.s32.totalorder %s187_s18, %s187_s18 }
  0x2d   :  { %258 = vpow2.f32 %v243_v8  ;;  %v81_v18 = vand.u32 2147483647, %v79_v13  ;;  %s318_s19 = scalar_lea.vmem %s187_s18, 128 }
  0x2e   :  { %260 = vpow2.f32 %v84_v9  ;;  %p319_p2 = scmp.ne.s32.totalorder %s187_s18, %s318_s19  ;;  %p324_p4 = scmp.lt.s32.totalorder %s318_s19, %s318_s19 }
  0x2f   :  { %262 = vpow2.f32 %v86_v10 }
  0x30   :  { %264 = vpow2.f32 %v244_v11  ;;  %p325_p5 = por %p324_p4, %p323_p3 }
  0x32   :  { %p326_p6 = pnand %p325_p5, %p319_p2 }
  0x35   :  { %v255_v14 = vpop.eup %254 }
  0x36   :  { %v257_v16 = vpop.eup %256  ;;  %v96_v17 = vadd.f32 1.0, %v255_v14 }
  0x37   :  { %v259_v19 = vpop.eup %258  ;;  %v97_v20 = vadd.f32 1.0, %v257_v16 }
  0x38   :  { %v261_v21 = vpop.eup %260  ;;  %266 = vrcp.f32 %v96_v17  ;;  %v108_v22 = vadd.f32 1.0, %v259_v19 }
  0x39   :  { %v263_v23 = vpop.eup %262  ;;  %268 = vrcp.f32 %v97_v20  ;;  %v88_v24 = vmul.f32 %v261_v21, %v80_v15 }
  0x3a   :  { %v265_v25 = vpop.eup %264  ;;  %v89_v26 = vmul.f32 %v263_v23, %v81_v18  ;;  %270 = vrcp.f32 %v108_v22 }
  0x3b   :  { %v109_v27 = vadd.f32 1.0, %v265_v25 }
  0x3c   :  { %v122_v28 = vadd.f32 %v89_v26, %v88_v24 }
  0x3d   :  { %272 = vrcp.f32 %v109_v27 }
  0x3e   :  { %124 = vst [vmem:[#allocation7] sm:$0xff] %v122_v28 }
  0x3f   :  { %329 = shalt.err (!%p326_p6)
}
  0x40   :  { %s330_s22 = scalar_lea.hbm %s528_s2, 128 }
  0x41   :  { %p331_p7 = scmp.ne.s32.totalorder %s528_s2, %s330_s22  ;;  %p334_p8 = scmp.lt.u32.totalorder %s330_s22, %s528_s2 }
  0x43   :  { %p336_p9 = pnand %p334_p8, %p331_p7 }
  0x45   :  { %339 = shalt.err (!%p336_p9)
}
  0x46   :  { %189 = dma.vmem_to_hbm [thread:$0]  %s187_s18, 128, %s528_s2, [#allocation4]   ;;  %v267_v29 = vpop.eup %266 }
  0x47   :  { %v269_v30 = vpop.eup %268  ;;  %s421_s29 = smov [#allocation8]   ;;  %s422_s6 = smov [#allocation10]  }
  0x48   :  { %s196_s30 = sshll.u32 %s421_s29, 4  ;;  %v271_v31 = vpop.eup %270  ;;  %v126_v32 = vadd.f32 %v269_v30, %v267_v29  ;;  %s206_s7 = sshll.u32 %s422_s6, 4  ;;  %s197_s30 = int_to_ptr.vmem [resolvable:$true] %s196_s30  ;;  %s207_s7 = int_to_ptr.vmem [resolvable:$true] %s206_s7 }
  0x49   :  { %v114_v33 = vmul.f32 %v271_v31, %v267_v29  ;;  %v273_v34 = vpop.eup %272  ;;  %s423_s8 = smov [#allocation11]   ;;  %s340_s10 = scalar_lea.vmem %s197_s30, 128 }
  0x4a   :  { %128 = vst [vmem:[#allocation8] sm:$0xff] %v126_v32  ;;  %v130_v35 = vadd.f32 %v273_v34, %v271_v31  ;;  %v115_v36 = vmul.f32 %v273_v34, %v269_v30  ;;  %s216_s9 = sshll.u32 %s423_s8, 4  ;;  %p341_p10 = scmp.ne.s32.totalorder %s197_s30, %s340_s10  ;;  %s217_s9 = int_to_ptr.vmem [resolvable:$true] %s216_s9 }
  0x4b   :  { %p345_p11 = scmp.lt.s32.totalorder %s197_s30, %s197_s30  ;;  %p346_p12 = scmp.lt.s32.totalorder %s340_s10, %s340_s10 }
  0x4d   :  { %p347_p13 = por %p346_p12, %p345_p11 }
  0x4f   :  { %p348_p0 = pnand %p347_p13, %p341_p10 }
  0x51   :  { %351 = shalt.err (!%p348_p0)
}
  0x52   :  { %s352_s12 = scalar_lea.hbm %s529_s3, 128 }
  0x53   :  { %p353_p1 = scmp.ne.s32.totalorder %s529_s3, %s352_s12  ;;  %p356_p2 = scmp.lt.u32.totalorder %s352_s12, %s529_s3 }
  0x55   :  { %p358_p3 = pnand %p356_p2, %p353_p1 }
  0x57   :  { %361 = shalt.err (!%p358_p3)
}
  0x58   :  { %199 = dma.vmem_to_hbm [thread:$0]  %s197_s30, 128, %s529_s3, [#allocation9]   ;;  %v134_v37 = vadd.f32 %v115_v36, %v114_v33  ;;  %132 = vst [vmem:[#allocation10] sm:$0xff] %v130_v35 }
  0x59   :  { %s362_s1 = scalar_lea.vmem %s207_s7, 128  ;;  %p367_p5 = scmp.lt.s32.totalorder %s207_s7, %s207_s7 }
  0x5a   :  { %p363_p4 = scmp.ne.s32.totalorder %s207_s7, %s362_s1  ;;  %p368_p6 = scmp.lt.s32.totalorder %s362_s1, %s362_s1 }
  0x5c   :  { %p369_p7 = por %p368_p6, %p367_p5 }
  0x5e   :  { %p370_p8 = pnand %p369_p7, %p363_p4 }
  0x60   :  { %373 = shalt.err (!%p370_p8)
}
  0x61   :  { %s374_s20 = scalar_lea.hbm %s530_s4, 128 }
  0x62   :  { %p375_p9 = scmp.ne.s32.totalorder %s530_s4, %s374_s20  ;;  %p378_p10 = scmp.lt.u32.totalorder %s374_s20, %s530_s4 }
  0x64   :  { %p380_p11 = pnand %p378_p10, %p375_p9 }
  0x66   :  { %383 = shalt.err (!%p380_p11)
}
  0x67   :  { %209 = dma.vmem_to_hbm [thread:$0]  %s207_s7, 128, %s530_s4, [#allocation9]   ;;  %136 = vst [vmem:[#allocation11] sm:$0xff] %v134_v37 }
  0x68   :  { %s384_s26 = scalar_lea.vmem %s217_s9, 128  ;;  %p389_p13 = scmp.lt.s32.totalorder %s217_s9, %s217_s9 }
  0x69   :  { %p385_p12 = scmp.ne.s32.totalorder %s217_s9, %s384_s26  ;;  %p390_p0 = scmp.lt.s32.totalorder %s384_s26, %s384_s26 }
  0x6b   :  { %p391_p1 = por %p390_p0, %p389_p13 }
  0x6d   :  { %p392_p2 = pnand %p391_p1, %p385_p12 }
  0x6f   :  { %395 = shalt.err (!%p392_p2)
}
  0x70   :  { %s396_s29 = scalar_lea.hbm %s531_s5, 128 }
  0x71   :  { %p397_p3 = scmp.ne.s32.totalorder %s531_s5, %s396_s29  ;;  %p400_p4 = scmp.lt.u32.totalorder %s396_s29, %s531_s5 }
  0x73   :  { %p402_p5 = pnand %p400_p4, %p397_p3 }
  0x75   :  { %405 = shalt.err (!%p402_p5)
}
  0x76   :  { %219 = dma.vmem_to_hbm [thread:$0]  %s217_s9, 128, %s531_s5, [#allocation12]  }
  0x77   :  { %410 = dma.done.wait [#allocation4], 128  }
  0x78   :  { %411 = vsyncadd [#allocation4], 4294967168 }
  0x79   :  { %412 = dma.done.wait [#allocation9], 256  }
  0x7a   :  { %413 = vsyncadd [#allocation9], 4294967040 }
  0x7b   :  { %414 = dma.done.wait [#allocation12], 128  }
  0x7c   :  { %415 = vsyncadd [#allocation12], 4294967168 }
  0x7d   :  { %232 = vsyncpa [#allocation3], 1 }
  0x7e   :  { %233 = vsyncpa [#allocation6], 1 }
  0x7f   :  { %234 = vsyncpa [#allocation4], 1 }
  0x80   :  { %235 = vsyncpa [#allocation9], 1 }
  0x81   :  { %236 = vsyncpa [#allocation12], 1 }

</bundles_post_ra>
